<compile_context>
chip_gen: v5e
topology: v5e:2x2
jax: 0.10.0
libtpu: 0.0.40
codegen_flags: <defaults>
</compile_context>

<pallas_src>
import functools

import jax
import jax.numpy as jnp
from jax import lax
from jax.experimental import pallas as pl
from jax.experimental.pallas import tpu as pltpu

# ---------------- model hyper-parameters (small, forward-consistent) --------
BATCH = 2
SEQ_LEN = 8           # src_len
VOCAB = 16            # input_dimension
EMB_DIM = 32          # embedding_dimension
HID_DIM = 32          # hidden_dim
KERNEL_SIZE = 3
NUM_LAYERS = 3
MAX_LEN = 16          # max_length
SCALE = 0.7071067811865476  # sqrt(0.5)

# ---------------- packed param-slab layout (row offsets) --------------------
TAB_ROWS = VOCAB + MAX_LEN                                  # 32
EMB_OFF = 0
CONV_OFF = EMB_OFF + TAB_ROWS                               # 32
WOUT_OFF = CONV_OFF + NUM_LAYERS * KERNEL_SIZE * HID_DIM    # 320
BCONV_OFF = WOUT_OFF + HID_DIM                              # 352
BIN_ROW = NUM_LAYERS                                        # index inside bias block
BOUT_ROW = NUM_LAYERS + 1
SLAB_ROWS = BCONV_OFF + NUM_LAYERS + 2                      # 357
SLAB_LANES = 2 * HID_DIM                                    # 64


# ---------------------------- Pallas kernel ---------------------------------
def _encoder_kernel(src_ref, slab_ref, out_ref, *, num_layers, ksize, seq_len,
                    vocab, tab_rows, emb_dim, hid):
    N = src_ref.shape[0]              # B * L rows (batch folded into sublanes)
    pad = (ksize - 1) // 2
    scale = jnp.float32(SCALE)

    # ---- in-kernel position ids (no pos input / DMA) ------------------------
    row = lax.broadcasted_iota(jnp.int32, (N, 1), 0)
    if seq_len > 0 and (seq_len & (seq_len - 1)) == 0:      # power-of-two fast path
        pos_ids = row & (seq_len - 1)
    else:
        pos_ids = row % seq_len

    src_ids = src_ref[...]                                  # (N, 1) int32

    # ---- fused word+pos one-hot against packed table: ONE matmul ------------
    # lanes [:E] of the table rows -> emb; lanes [E:] -> emb @ w_in (prefused).
    lane = lax.broadcasted_iota(jnp.int32, (N, tab_rows), 1)
    oh = ((lane == src_ids) | (lane == pos_ids + vocab)).astype(jnp.float32)
    ep = jnp.dot(oh, slab_ref[EMB_OFF:EMB_OFF + tab_rows, :],
                 preferred_element_type=jnp.float32)        # (N, E + H)
    emb = ep[:, :emb_dim]                                   # (N, E)

    # ---- bias block: one aligned (L+2, 2H) load, sliced as values -----------
    biases = slab_ref[BCONV_OFF:BCONV_OFF + num_layers + 2, :]
    b_in = biases[BIN_ROW:BIN_ROW + 1, :hid]                # (1, H)
    b_out = biases[BOUT_ROW:BOUT_ROW + 1, :emb_dim]         # (1, E)

    x = ep[:, emb_dim:] + b_in                              # (N, H) conv embedding
    # dropout == identity (eval mode)

    # ---- hoisted shift-validity masks (batch-boundary aware) ----------------
    maskf = [None] * ksize
    for k in range(ksize):
        d = k - pad                   # source offset: y[t] uses x[t + d]
        if d != 0:
            m = (pos_ids + d >= 0) & (pos_ids + d < seq_len)
            maskf[k] = m.astype(jnp.float32)                # (N, 1)

    # ---- conv + GLU + residual stack: K per-tap accumulated MXU dots ---------
    for l in range(num_layers):
        acc = None
        for k in range(ksize):
            d = k - pad
            if d == 0:
                col = x
            else:
                col = pltpu.roll(x, shift=(-d) % N, axis=0) * maskf[k]
            r0 = CONV_OFF + (l * ksize + k) * hid
            w_tap = slab_ref[r0:r0 + hid, :]                # (H, 2H)
            t = jnp.dot(col, w_tap, preferred_element_type=jnp.float32)
            acc = t if acc is None else acc + t
        y = acc + biases[l:l + 1, :]                        # (N, 2H)
        a = y[:, :hid]
        g = y[:, hid:]
        x = (a * jax.nn.sigmoid(g) + x) * scale             # GLU + residual

    # ---- output projection + merged single store -----------------------------
    w_out = slab_ref[WOUT_OFF:WOUT_OFF + hid, :emb_dim]     # (H, E)
    ec = jnp.dot(x, w_out, preferred_element_type=jnp.float32) + b_out
    out_ref[...] = jnp.concatenate(
        [ec, (ec + emb) * scale], axis=-1).astype(out_ref.dtype)


# ---------------------------- wrappers ---------------------------------------
def pack_params(params):
    """One-time packing of all weights into a single lane-aligned f32 slab."""
    assert EMB_DIM == HID_DIM, "packed table assumes E + H == 2H lanes"
    table = jnp.concatenate([params["word_emb"], params["pos_emb"]], axis=0)
    emb_proj = jnp.concatenate([table, table @ params["w_in"]], axis=1)  # (32, 64)
    w_conv = params["w_conv"].reshape(
        NUM_LAYERS * KERNEL_SIZE * HID_DIM, 2 * HID_DIM)                  # (288, 64)

    def pad_lanes(a):
        return jnp.pad(a, ((0, 0), (0, SLAB_LANES - a.shape[1])))

    slab = jnp.concatenate([
        emb_proj,                                            # rows [0, 32)
        w_conv,                                              # rows [32, 320)
        pad_lanes(params["w_out"]),                          # rows [320, 352)
        params["b_conv"].reshape(NUM_LAYERS, 2 * HID_DIM),   # rows [352, 355)
        pad_lanes(params["b_in"]),                           # row 355
        pad_lanes(params["b_out"]),                          # row 356
    ], axis=0).astype(jnp.float32)
    assert slab.shape == (SLAB_ROWS, SLAB_LANES)
    return slab


def encoder_pallas(src, slab):
    """src: (B, L) int ids, slab: packed params -> (embed_conv, out), (B,L,E)."""
    B, L = src.shape
    N = B * L
    E = EMB_DIM
    src_flat = src.astype(jnp.int32).reshape(N, 1)

    kernel = functools.partial(
        _encoder_kernel, num_layers=NUM_LAYERS, ksize=KERNEL_SIZE, seq_len=L,
        vocab=VOCAB, tab_rows=TAB_ROWS, emb_dim=E, hid=HID_DIM)

    vmem = pl.BlockSpec(memory_space=pltpu.MemorySpace.VMEM)
    res = pl.pallas_call(
        kernel,
        out_shape=jax.ShapeDtypeStruct((N, 2 * E), jnp.float32),
        in_specs=[vmem, vmem],
        out_specs=vmem,
    )(src_flat, slab)

    embed_conv = res[:, :E].reshape(B, L, E)
    out = res[:, E:].reshape(B, L, E)
    return embed_conv, out


# ---------------------------- reference --------------------------------------
def ref_forward(src, params):
    """Pure-JAX reference mirroring the PyTorch forward (eval mode)."""
    B, L = src.shape
    emb = (params["word_emb"][src]
           + params["pos_emb"][jnp.arange(L)][None]).astype(jnp.float32)
    H = params["w_in"].shape[1]
    pad = (KERNEL_SIZE - 1) // 2
    scale = jnp.float32(SCALE)

    x = emb @ params["w_in"] + params["b_in"]            # (B, L, H)
    for l in range(NUM_LAYERS):
        xp = jnp.pad(x, ((0, 0), (pad, pad), (0, 0)))
        y = jnp.zeros((B, L, 2 * H), jnp.float32) + params["b_conv"][l]
        for k in range(KERNEL_SIZE):
            y = y + jnp.einsum("blh,ho->blo", xp[:, k:k + L, :],
                               params["w_conv"][l, k])
        a, g = y[..., :H], y[..., H:]
        x = (a * jax.nn.sigmoid(g) + x) * scale
    ec = x @ params["w_out"] + params["b_out"]
    out = (ec + emb) * scale
    return ec, out


def init_params(key):
    ks = jax.random.split(key, 7)
    s = 0.1
    return {
        "word_emb": s * jax.random.normal(ks[0], (VOCAB, EMB_DIM), jnp.float32),
        "pos_emb":  s * jax.random.normal(ks[1], (MAX_LEN, EMB_DIM), jnp.float32),
        "w_in":     s * jax.random.normal(ks[2], (EMB_DIM, HID_DIM), jnp.float32),
        "b_in":     s * jax.random.normal(ks[3], (1, HID_DIM), jnp.float32),
        "w_conv":   s * jax.random.normal(ks[4],
                        (NUM_LAYERS, KERNEL_SIZE, HID_DIM, 2 * HID_DIM),
                        jnp.float32),
        "b_conv":   s * jax.random.normal(ks[5],
                        (NUM_LAYERS, 1, 2 * HID_DIM), jnp.float32),
        "w_out":    s * jax.random.normal(ks[6], (HID_DIM, EMB_DIM), jnp.float32),
        "b_out":    jnp.zeros((1, EMB_DIM), jnp.float32),
    }


if __name__ == "__main__":
    params = init_params(jax.random.PRNGKey(0))
    src = jax.random.randint(jax.random.PRNGKey(1), (BATCH, SEQ_LEN), 0, VOCAB)
    # one-hot embedding requires in-range ids (PyTorch gather would error OOB)
    assert bool(jnp.all((src >= 0) & (src < VOCAB)))

    slab = jax.block_until_ready(pack_params(params))   # init-time packing

    embed_conv, out = encoder_pallas(src, slab)
    embed_conv = jax.block_until_ready(embed_conv)
    out = jax.block_until_ready(out)

    ec_ref, out_ref_ = ref_forward(src, params)
    assert embed_conv.shape == (BATCH, SEQ_LEN, EMB_DIM)
    assert out.shape == (BATCH, SEQ_LEN, EMB_DIM)
    assert jnp.allclose(embed_conv, ec_ref, atol=1e-4, rtol=1e-4)
    assert jnp.allclose(out, out_ref_, atol=1e-4, rtol=1e-4)

    print("KERNEL_OK")
</pallas_src>

<mosaic_0001>
module attributes {stable_mosaic.version = 11 : i64} {
  func.func @_encoder_kernel(%arg0: memref<16x1xi32, #tpu.memory_space<vmem>>, %arg1: memref<357x64xf32, #tpu.memory_space<vmem>>, %arg2: memref<16x64xf32, #tpu.memory_space<vmem>>) attributes {dimension_semantics = [], scalar_prefetch = 0 : i64, scratch_operands = 0 : i64, tpu.core_type = #tpu.core_type<tc>} {
    %0 = tpu.iota {dimensions = array<i32: 0>} : vector<16x1xi32>
    %c7_i32 = arith.constant 7 : i32
    %1 = vector.broadcast %c7_i32 : i32 to vector<16x1xi32>
    %2 = arith.andi %0, %1 : vector<16x1xi32>
    %c0 = arith.constant 0 : index
    %c0_0 = arith.constant 0 : index
    %3 = vector.load %arg0[%c0, %c0_0] : memref<16x1xi32, #tpu.memory_space<vmem>>, vector<16x1xi32>
    %4 = tpu.iota {dimensions = array<i32: 1>} : vector<16x32xi32>
    %5 = vector.broadcast %3 : vector<16x1xi32> to vector<16x32xi32>
    %6 = arith.cmpi eq, %4, %5 : vector<16x32xi32>
    %c16_i32 = arith.constant 16 : i32
    %7 = vector.broadcast %c16_i32 : i32 to vector<16x1xi32>
    %8 = arith.addi %2, %7 : vector<16x1xi32>
    %9 = vector.broadcast %8 : vector<16x1xi32> to vector<16x32xi32>
    %10 = arith.cmpi eq, %4, %9 : vector<16x32xi32>
    %11 = arith.ori %6, %10 : vector<16x32xi1>
    %12 = arith.extui %11 : vector<16x32xi1> to vector<16x32xi32>
    %13 = arith.sitofp %12 : vector<16x32xi32> to vector<16x32xf32>
    %c0_1 = arith.constant 0 : index
    %c0_2 = arith.constant 0 : index
    %14 = vector.load %arg1[%c0_1, %c0_2] : memref<357x64xf32, #tpu.memory_space<vmem>>, vector<32x64xf32>
    %cst = arith.constant dense<0.000000e+00> : vector<16x64xf32>
    %15 = tpu.matmul %13, %14, %cst {dimension_numbers = #tpu.dot_dimension_numbers<[1], [0], [0], [1], [0, 0, 1, 1], [], []>} : vector<16x32xf32>, vector<32x64xf32>, vector<16x64xf32> -> vector<16x64xf32>
    %16 = vector.extract_strided_slice %15 {offsets = [0, 0], sizes = [16, 32], strides = [1, 1]} : vector<16x64xf32> to vector<16x32xf32>
    %c352 = arith.constant 352 : index
    %c0_3 = arith.constant 0 : index
    %17 = vector.load %arg1[%c352, %c0_3] : memref<357x64xf32, #tpu.memory_space<vmem>>, vector<5x64xf32>
    %18 = vector.extract_strided_slice %17 {offsets = [3, 0], sizes = [1, 32], strides = [1, 1]} : vector<5x64xf32> to vector<1x32xf32>
    %19 = vector.extract_strided_slice %17 {offsets = [4, 0], sizes = [1, 32], strides = [1, 1]} : vector<5x64xf32> to vector<1x32xf32>
    %20 = vector.extract_strided_slice %15 {offsets = [0, 32], sizes = [16, 32], strides = [1, 1]} : vector<16x64xf32> to vector<16x32xf32>
    %21 = vector.broadcast %18 : vector<1x32xf32> to vector<16x32xf32>
    %22 = arith.addf %20, %21 : vector<16x32xf32>
    %c-1_i32 = arith.constant -1 : i32
    %23 = vector.broadcast %c-1_i32 : i32 to vector<16x1xi32>
    %24 = arith.addi %2, %23 : vector<16x1xi32>
    %c0_i32 = arith.constant 0 : i32
    %25 = vector.broadcast %c0_i32 : i32 to vector<16x1xi32>
    %26 = arith.cmpi sge, %24, %25 : vector<16x1xi32>
    %c-1_i32_4 = arith.constant -1 : i32
    %27 = vector.broadcast %c-1_i32_4 : i32 to vector<16x1xi32>
    %28 = arith.addi %2, %27 : vector<16x1xi32>
    %c8_i32 = arith.constant 8 : i32
    %29 = vector.broadcast %c8_i32 : i32 to vector<16x1xi32>
    %30 = arith.cmpi slt, %28, %29 : vector<16x1xi32>
    %31 = arith.andi %26, %30 : vector<16x1xi1>
    %32 = arith.extui %31 : vector<16x1xi1> to vector<16x1xi32>
    %33 = arith.sitofp %32 : vector<16x1xi32> to vector<16x1xf32>
    %c1_i32 = arith.constant 1 : i32
    %34 = vector.broadcast %c1_i32 : i32 to vector<16x1xi32>
    %35 = arith.addi %2, %34 : vector<16x1xi32>
    %c0_i32_5 = arith.constant 0 : i32
    %36 = vector.broadcast %c0_i32_5 : i32 to vector<16x1xi32>
    %37 = arith.cmpi sge, %35, %36 : vector<16x1xi32>
    %c1_i32_6 = arith.constant 1 : i32
    %38 = vector.broadcast %c1_i32_6 : i32 to vector<16x1xi32>
    %39 = arith.addi %2, %38 : vector<16x1xi32>
    %c8_i32_7 = arith.constant 8 : i32
    %40 = vector.broadcast %c8_i32_7 : i32 to vector<16x1xi32>
    %41 = arith.cmpi slt, %39, %40 : vector<16x1xi32>
    %42 = arith.andi %37, %41 : vector<16x1xi1>
    %43 = arith.extui %42 : vector<16x1xi1> to vector<16x1xi32>
    %44 = arith.sitofp %43 : vector<16x1xi32> to vector<16x1xf32>
    %c1_i32_8 = arith.constant 1 : i32
    %45 = tpu.dynamic_rotate %22 by %c1_i32_8 dim 0 : vector<16x32xf32>, i32 -> vector<16x32xf32>
    %46 = vector.broadcast %33 : vector<16x1xf32> to vector<16x32xf32>
    %47 = arith.mulf %45, %46 : vector<16x32xf32>
    %c32 = arith.constant 32 : index
    %c0_9 = arith.constant 0 : index
    %48 = vector.load %arg1[%c32, %c0_9] : memref<357x64xf32, #tpu.memory_space<vmem>>, vector<32x64xf32>
    %cst_10 = arith.constant dense<0.000000e+00> : vector<16x64xf32>
    %49 = tpu.matmul %47, %48, %cst_10 {dimension_numbers = #tpu.dot_dimension_numbers<[1], [0], [0], [1], [0, 0, 1, 1], [], []>} : vector<16x32xf32>, vector<32x64xf32>, vector<16x64xf32> -> vector<16x64xf32>
    %c64 = arith.constant 64 : index
    %c0_11 = arith.constant 0 : index
    %50 = vector.load %arg1[%c64, %c0_11] : memref<357x64xf32, #tpu.memory_space<vmem>>, vector<32x64xf32>
    %cst_12 = arith.constant dense<0.000000e+00> : vector<16x64xf32>
    %51 = tpu.matmul %22, %50, %cst_12 {dimension_numbers = #tpu.dot_dimension_numbers<[1], [0], [0], [1], [0, 0, 1, 1], [], []>} : vector<16x32xf32>, vector<32x64xf32>, vector<16x64xf32> -> vector<16x64xf32>
    %52 = arith.addf %49, %51 : vector<16x64xf32>
    %c15_i32 = arith.constant 15 : i32
    %53 = tpu.dynamic_rotate %22 by %c15_i32 dim 0 : vector<16x32xf32>, i32 -> vector<16x32xf32>
    %54 = vector.broadcast %44 : vector<16x1xf32> to vector<16x32xf32>
    %55 = arith.mulf %53, %54 : vector<16x32xf32>
    %c96 = arith.constant 96 : index
    %c0_13 = arith.constant 0 : index
    %56 = vector.load %arg1[%c96, %c0_13] : memref<357x64xf32, #tpu.memory_space<vmem>>, vector<32x64xf32>
    %cst_14 = arith.constant dense<0.000000e+00> : vector<16x64xf32>
    %57 = tpu.matmul %55, %56, %cst_14 {dimension_numbers = #tpu.dot_dimension_numbers<[1], [0], [0], [1], [0, 0, 1, 1], [], []>} : vector<16x32xf32>, vector<32x64xf32>, vector<16x64xf32> -> vector<16x64xf32>
    %58 = arith.addf %52, %57 : vector<16x64xf32>
    %59 = vector.extract_strided_slice %17 {offsets = [0, 0], sizes = [1, 64], strides = [1, 1]} : vector<5x64xf32> to vector<1x64xf32>
    %60 = vector.broadcast %59 : vector<1x64xf32> to vector<16x64xf32>
    %61 = arith.addf %58, %60 : vector<16x64xf32>
    %62 = vector.extract_strided_slice %61 {offsets = [0, 0], sizes = [16, 32], strides = [1, 1]} : vector<16x64xf32> to vector<16x32xf32>
    %63 = vector.extract_strided_slice %61 {offsets = [0, 32], sizes = [16, 32], strides = [1, 1]} : vector<16x64xf32> to vector<16x32xf32>
    %64 = arith.negf %63 : vector<16x32xf32>
    %65 = math.exp %64 : vector<16x32xf32>
    %cst_15 = arith.constant 1.000000e+00 : f32
    %66 = vector.broadcast %cst_15 : f32 to vector<16x32xf32>
    %67 = arith.addf %66, %65 : vector<16x32xf32>
    %68 = arith.divf %66, %67 : vector<16x32xf32>
    %69 = arith.mulf %62, %68 : vector<16x32xf32>
    %70 = arith.addf %69, %22 : vector<16x32xf32>
    %cst_16 = arith.constant 0.707106769 : f32
    %71 = vector.broadcast %cst_16 : f32 to vector<16x32xf32>
    %72 = arith.mulf %70, %71 : vector<16x32xf32>
    %c1_i32_17 = arith.constant 1 : i32
    %73 = tpu.dynamic_rotate %72 by %c1_i32_17 dim 0 : vector<16x32xf32>, i32 -> vector<16x32xf32>
    %74 = vector.broadcast %33 : vector<16x1xf32> to vector<16x32xf32>
    %75 = arith.mulf %73, %74 : vector<16x32xf32>
    %c128 = arith.constant 128 : index
    %c0_18 = arith.constant 0 : index
    %76 = vector.load %arg1[%c128, %c0_18] : memref<357x64xf32, #tpu.memory_space<vmem>>, vector<32x64xf32>
    %cst_19 = arith.constant dense<0.000000e+00> : vector<16x64xf32>
    %77 = tpu.matmul %75, %76, %cst_19 {dimension_numbers = #tpu.dot_dimension_numbers<[1], [0], [0], [1], [0, 0, 1, 1], [], []>} : vector<16x32xf32>, vector<32x64xf32>, vector<16x64xf32> -> vector<16x64xf32>
    %c160 = arith.constant 160 : index
    %c0_20 = arith.constant 0 : index
    %78 = vector.load %arg1[%c160, %c0_20] : memref<357x64xf32, #tpu.memory_space<vmem>>, vector<32x64xf32>
    %cst_21 = arith.constant dense<0.000000e+00> : vector<16x64xf32>
    %79 = tpu.matmul %72, %78, %cst_21 {dimension_numbers = #tpu.dot_dimension_numbers<[1], [0], [0], [1], [0, 0, 1, 1], [], []>} : vector<16x32xf32>, vector<32x64xf32>, vector<16x64xf32> -> vector<16x64xf32>
    %80 = arith.addf %77, %79 : vector<16x64xf32>
    %c15_i32_22 = arith.constant 15 : i32
    %81 = tpu.dynamic_rotate %72 by %c15_i32_22 dim 0 : vector<16x32xf32>, i32 -> vector<16x32xf32>
    %82 = vector.broadcast %44 : vector<16x1xf32> to vector<16x32xf32>
    %83 = arith.mulf %81, %82 : vector<16x32xf32>
    %c192 = arith.constant 192 : index
    %c0_23 = arith.constant 0 : index
    %84 = vector.load %arg1[%c192, %c0_23] : memref<357x64xf32, #tpu.memory_space<vmem>>, vector<32x64xf32>
    %cst_24 = arith.constant dense<0.000000e+00> : vector<16x64xf32>
    %85 = tpu.matmul %83, %84, %cst_24 {dimension_numbers = #tpu.dot_dimension_numbers<[1], [0], [0], [1], [0, 0, 1, 1], [], []>} : vector<16x32xf32>, vector<32x64xf32>, vector<16x64xf32> -> vector<16x64xf32>
    %86 = arith.addf %80, %85 : vector<16x64xf32>
    %87 = vector.extract_strided_slice %17 {offsets = [1, 0], sizes = [1, 64], strides = [1, 1]} : vector<5x64xf32> to vector<1x64xf32>
    %88 = vector.broadcast %87 : vector<1x64xf32> to vector<16x64xf32>
    %89 = arith.addf %86, %88 : vector<16x64xf32>
    %90 = vector.extract_strided_slice %89 {offsets = [0, 0], sizes = [16, 32], strides = [1, 1]} : vector<16x64xf32> to vector<16x32xf32>
    %91 = vector.extract_strided_slice %89 {offsets = [0, 32], sizes = [16, 32], strides = [1, 1]} : vector<16x64xf32> to vector<16x32xf32>
    %92 = arith.negf %91 : vector<16x32xf32>
    %93 = math.exp %92 : vector<16x32xf32>
    %cst_25 = arith.constant 1.000000e+00 : f32
    %94 = vector.broadcast %cst_25 : f32 to vector<16x32xf32>
    %95 = arith.addf %94, %93 : vector<16x32xf32>
    %96 = arith.divf %94, %95 : vector<16x32xf32>
    %97 = arith.mulf %90, %96 : vector<16x32xf32>
    %98 = arith.addf %97, %72 : vector<16x32xf32>
    %cst_26 = arith.constant 0.707106769 : f32
    %99 = vector.broadcast %cst_26 : f32 to vector<16x32xf32>
    %100 = arith.mulf %98, %99 : vector<16x32xf32>
    %c1_i32_27 = arith.constant 1 : i32
    %101 = tpu.dynamic_rotate %100 by %c1_i32_27 dim 0 : vector<16x32xf32>, i32 -> vector<16x32xf32>
    %102 = vector.broadcast %33 : vector<16x1xf32> to vector<16x32xf32>
    %103 = arith.mulf %101, %102 : vector<16x32xf32>
    %c224 = arith.constant 224 : index
    %c0_28 = arith.constant 0 : index
    %104 = vector.load %arg1[%c224, %c0_28] : memref<357x64xf32, #tpu.memory_space<vmem>>, vector<32x64xf32>
    %cst_29 = arith.constant dense<0.000000e+00> : vector<16x64xf32>
    %105 = tpu.matmul %103, %104, %cst_29 {dimension_numbers = #tpu.dot_dimension_numbers<[1], [0], [0], [1], [0, 0, 1, 1], [], []>} : vector<16x32xf32>, vector<32x64xf32>, vector<16x64xf32> -> vector<16x64xf32>
    %c256 = arith.constant 256 : index
    %c0_30 = arith.constant 0 : index
    %106 = vector.load %arg1[%c256, %c0_30] : memref<357x64xf32, #tpu.memory_space<vmem>>, vector<32x64xf32>
    %cst_31 = arith.constant dense<0.000000e+00> : vector<16x64xf32>
    %107 = tpu.matmul %100, %106, %cst_31 {dimension_numbers = #tpu.dot_dimension_numbers<[1], [0], [0], [1], [0, 0, 1, 1], [], []>} : vector<16x32xf32>, vector<32x64xf32>, vector<16x64xf32> -> vector<16x64xf32>
    %108 = arith.addf %105, %107 : vector<16x64xf32>
    %c15_i32_32 = arith.constant 15 : i32
    %109 = tpu.dynamic_rotate %100 by %c15_i32_32 dim 0 : vector<16x32xf32>, i32 -> vector<16x32xf32>
    %110 = vector.broadcast %44 : vector<16x1xf32> to vector<16x32xf32>
    %111 = arith.mulf %109, %110 : vector<16x32xf32>
    %c288 = arith.constant 288 : index
    %c0_33 = arith.constant 0 : index
    %112 = vector.load %arg1[%c288, %c0_33] : memref<357x64xf32, #tpu.memory_space<vmem>>, vector<32x64xf32>
    %cst_34 = arith.constant dense<0.000000e+00> : vector<16x64xf32>
    %113 = tpu.matmul %111, %112, %cst_34 {dimension_numbers = #tpu.dot_dimension_numbers<[1], [0], [0], [1], [0, 0, 1, 1], [], []>} : vector<16x32xf32>, vector<32x64xf32>, vector<16x64xf32> -> vector<16x64xf32>
    %114 = arith.addf %108, %113 : vector<16x64xf32>
    %115 = vector.extract_strided_slice %17 {offsets = [2, 0], sizes = [1, 64], strides = [1, 1]} : vector<5x64xf32> to vector<1x64xf32>
    %116 = vector.broadcast %115 : vector<1x64xf32> to vector<16x64xf32>
    %117 = arith.addf %114, %116 : vector<16x64xf32>
    %118 = vector.extract_strided_slice %117 {offsets = [0, 0], sizes = [16, 32], strides = [1, 1]} : vector<16x64xf32> to vector<16x32xf32>
    %119 = vector.extract_strided_slice %117 {offsets = [0, 32], sizes = [16, 32], strides = [1, 1]} : vector<16x64xf32> to vector<16x32xf32>
    %120 = arith.negf %119 : vector<16x32xf32>
    %121 = math.exp %120 : vector<16x32xf32>
    %cst_35 = arith.constant 1.000000e+00 : f32
    %122 = vector.broadcast %cst_35 : f32 to vector<16x32xf32>
    %123 = arith.addf %122, %121 : vector<16x32xf32>
    %124 = arith.divf %122, %123 : vector<16x32xf32>
    %125 = arith.mulf %118, %124 : vector<16x32xf32>
    %126 = arith.addf %125, %100 : vector<16x32xf32>
    %cst_36 = arith.constant 0.707106769 : f32
    %127 = vector.broadcast %cst_36 : f32 to vector<16x32xf32>
    %128 = arith.mulf %126, %127 : vector<16x32xf32>
    %c320 = arith.constant 320 : index
    %c0_37 = arith.constant 0 : index
    %129 = vector.load %arg1[%c320, %c0_37] : memref<357x64xf32, #tpu.memory_space<vmem>>, vector<32x32xf32>
    %cst_38 = arith.constant dense<0.000000e+00> : vector<16x32xf32>
    %130 = tpu.matmul %128, %129, %cst_38 {dimension_numbers = #tpu.dot_dimension_numbers<[1], [0], [0], [1], [0, 0, 1, 1], [], []>} : vector<16x32xf32>, vector<32x32xf32>, vector<16x32xf32> -> vector<16x32xf32>
    %131 = vector.broadcast %19 : vector<1x32xf32> to vector<16x32xf32>
    %132 = arith.addf %130, %131 : vector<16x32xf32>
    %133 = arith.addf %132, %16 : vector<16x32xf32>
    %cst_39 = arith.constant 0.707106769 : f32
    %134 = vector.broadcast %cst_39 : f32 to vector<16x32xf32>
    %135 = arith.mulf %133, %134 : vector<16x32xf32>
    %136 = tpu.concatenate %132, %135 in 1 : vector<16x32xf32>, vector<16x32xf32> -> vector<16x64xf32>
    %c0_40 = arith.constant 0 : index
    %c0_41 = arith.constant 0 : index
    %137 = vector.load %arg2[%c0_40, %c0_41] : memref<16x64xf32, #tpu.memory_space<vmem>>, vector<16x64xf32>
    tpu.vector_store %arg2[%c0_40, %c0_41], %136 {strides = array<i32>} : memref<16x64xf32, #tpu.memory_space<vmem>>, vector<16x64xf32>,
    return
  }
}

</mosaic_0001>

<bundles_post_ra>
// kernel: tpu_custom_call.1
= control target key start
LH: loop header
LB: loop body
LE: loop exit
PB: predicated region body
PF: predicated region fallthrough
CT: control target
= control target key end

     0   :  { %v782_v2 = vmov 0   ;;  %s1107_s0 = inlined_call_operand.vmem [shape: s32[16,1], index: 0, kind: input, shape index: {}]   ;;  %s1108_s1 = inlined_call_operand.vmem [shape: f32[357,64], index: 1, kind: input, shape index: {}]   ;;  %s1109_s2 = inlined_call_operand.hbm [shape: f32[16,64], index: 2, kind: output, shape index: {}]  }
   0x1   :  { %v18_v0 = vld [vmem:[%s1107_s0 + $0x8] sm:$0xff]  ;;  %v42_v1 = vld [vmem:[%s1108_s1 + $0x18] sm:$0xff]  ;;  %731 = vset.pattern.permute.xlu0 %v782_v2  ;;  %v41_v3 = vld [vmem:[%s1108_s1 + $0x10] sm:$0xff] }
   0x2   :  { %720 = vmatpush.msra.mxu3 %v42_v1 }
   0x3   :  { %7 = vsyncpa [#allocation3], 0  ;;  %25 = vperm.xlu0 %731, %v18_v0   ;;  %62 = vmatpush.msra.mxu0 %v42_v1  ;;  %v17_v4 = vld [vmem:[%s1107_s0] sm:$0xff]  ;;  %v40_v5 = vld [vmem:[%s1108_s1 + $0x8] sm:$0xff]  ;;  %v12_v7 = vlaneseq  ;;  %s783_s0 = smov 32   ;;  %vm43_vm2 = vcmask 261120  }
   0x4   :  { %721 = vmatpush.msra.mxu3 %v41_v3  ;;  %v39_v6 = vld [vmem:[%s1108_s1] sm:$0xff]  ;;  %v784_v17 = vmov 0.0   ;;  %s785_s23 = smov 96   ;;  %v127_v27 = vld [vmem:[%s1108_s1 + $0x58] sm:$0xff]  ;;  %v126_v28 = vld [vmem:[%s1108_s1 + $0x50] sm:$0xff]  ;;  %s674_s25 = sshll.u32 %s1109_s2, 4  ;;  %s675_s25 = int_to_ptr.hbm [resolvable:$true] %s674_s25 }
   0x5   :  { %63 = vmatpush.msra.mxu0 %v41_v3  ;;  %v825_v8 = vld [vmem:[%s1108_s1 + $0x160] sm:$0x1f]  ;;  %v828_v10 = vshrl.u32 %v12_v7, 7  ;;  %v20_v13 = vand.u32 127, %v12_v7  ;;  %144 = vmatpush.msra.mxu1 %v127_v27  ;;  %v123_v29 = vld [vmem:[%s1108_s1 + $0x38] sm:$0xff]  ;;  %v125_v31 = vld [vmem:[%s1108_s1 + $0x48] sm:$0xff] }
   0x6   :  { %722 = vmatpush.msra.mxu3 %v40_v5  ;;  %v74_v9 = vperm.slane %v825_v8, 3  ;;  %v194_v30 = vld [vmem:[%s1108_s1 + $0x78] sm:$0xff]  ;;  %173 = vmatpush.msra.mxu2 %v123_v29  ;;  %v124_v32 = vld [vmem:[%s1108_s1 + $0x40] sm:$0xff]  ;;  %v122_v33 = vld [vmem:[%s1108_s1 + $0x30] sm:$0xff]  ;;  %v226_v1 = vperm.slane %v825_v8, 0  ;;  %s787_s26 = smov 128  }
   0x7   :  { %64 = vmatpush.msra.mxu0 %v40_v5  ;;  %v14_v11 = vadd.s32 8, %v828_v10  ;;  %v15_v15 = vand.u32 7, %v828_v10  ;;  %145 = vmatpush.msra.mxu1 %v126_v28  ;;  %v193_v34 = vld [vmem:[%s1108_s1 + $0x70] sm:$0xff]  ;;  %v121_v35 = vld [vmem:[%s1108_s1 + $0x28] sm:$0xff]  ;;  %v120_v37 = vld [vmem:[%s1108_s1 + $0x20] sm:$0xff]  ;;  %vm115_vm9 = vcmp.lt.s32.totalorder %v828_v10, 1 }
   0x8   :  { %723 = vmatpush.msra.mxu3 %v39_v6  ;;  %76 = vrot.lane.b32.xlu1 %v74_v9, %s783_s0  ;;  %v192_v36 = vld [vmem:[%s1108_s1 + $0x68] sm:$0xff]  ;;  %v191_v38 = vld [vmem:[%s1108_s1 + $0x60] sm:$0xff]  ;;  %vm186_vm10 = vcmp.lt.s32.totalorder %v828_v10, 7  ;;  %s788_s27 = smov 8  }
   0x9   :  { %65 = vmatpush.msra.mxu0 %v39_v6  ;;  %v832_v12 = vand.u32 7, %v14_v11  ;;  %v29_v19 = vadd.s32 16, %v15_v15  ;;  %146 = vmatpush.msra.mxu1 %v125_v31  ;;  %v81_v39 = vadd.s32 4294967295, %v15_v15  ;;  %v93_v40 = vadd.s32 1, %v15_v15 }
   0xa   :  { %213 = vmatpush.msrb.mxu3 %v194_v30  ;;  %174 = vmatpush.msra.mxu2 %v122_v33 }
   0xb   :  { %22 = vperm.xlu0 %731, %v17_v4   ;;  %v30_v14 = vadd.s32 16, %v832_v12  ;;  %vm31_vm4 = vcmp.eq.s32.totalorder %v20_v13, %v29_v19  ;;  %147 = vmatpush.msra.mxu1 %v124_v32  ;;  %vm83_vm7 = vcmp.ge.s32.totalorder %v81_v39, 0  ;;  %vm97_vm8 = vcmp.lt.s32.totalorder %v93_v40, 8 }
   0xc   :  { %214 = vmatpush.msrb.mxu3 %v193_v34  ;;  %175 = vmatpush.msra.mxu2 %v121_v35  ;;  %v889_v43 = vsel %vm83_vm7, 1.0, %v784_v17  ;;  %v893_v44 = vsel %vm97_vm8, 1.0, %v784_v17  ;;  %v82_v49 = vadd.s32 4294967295, %v832_v12  ;;  %v94_v50 = vadd.s32 1, %v832_v12  ;;  %v294_v12 = vld [vmem:[%s1108_s1 + $0xb8] sm:$0xff] }
   0xd   :  { %vm32_vm0 = vcmp.eq.s32.totalorder %v20_v13, %v30_v14  ;;  %313 = vmatpush.msrb.mxu0 %v294_v12 }
   0xe   :  { %215 = vmatpush.msrb.mxu3 %v192_v36  ;;  %176 = vmatpush.msra.mxu2 %v120_v37  ;;  %vm84_vm11 = vcmp.ge.s32.totalorder %v82_v49, 0  ;;  %vm98_vm12 = vcmp.lt.s32.totalorder %v94_v50, 8  ;;  %v290_v49 = vld [vmem:[%s1108_s1 + $0x98] sm:$0xff]  ;;  %v361_v50 = vld [vmem:[%s1108_s1 + $0xd0] sm:$0xff] }
   0xf   :  { %v915_v55 = vsel %vm84_vm11, 1.0, %v784_v17  ;;  %v920_v57 = vsel %vm98_vm12, 1.0, %v784_v17  ;;  %342 = vmatpush.msrb.mxu1 %v290_v49 }
  0x10   :  { %216 = vmatpush.msrb.mxu3 %v191_v38 }
  0x75   :  { %v26_v16 = vpop.permute.xlu0 %25 }
  0x76   :  { %vm28_vm1 = vcmp.eq.s32.totalorder %v20_v13, %v26_v16 }
  0x77   :  { %vm34_vm3 = vmor %vm28_vm1, %vm32_vm0 }
  0x78   :  { %v687_v18 = vsel %vm34_vm3, 1.0, %v784_v17 }
  0x79   :  { %689 = vmatmul.msk.f32.vlgmr.msra.gmra.mxu3 %vm43_vm2, %v687_v18 }
  0x7a   :  { %v77_v22 = vpop.permute.xlu1 %76 }
  0x7d   :  { %v23_v20 = vpop.permute.xlu0 %22 }
  0x7e   :  { %vm27_vm5 = vcmp.eq.s32.totalorder %v20_v13, %v23_v20 }
  0x7f   :  { %vm33_vm6 = vmor %vm27_vm5, %vm31_vm4 }
  0x80   :  { %v686_v21 = vsel %vm33_vm6, 1.0, %v784_v17 }
  0x81   :  { %688 = vmatmul.msk.f32.vlgmr.msra.gmra.mxu0 %vm43_vm2, %v686_v21 }
  0xfc   :  { %v840_v23 = vpop.f32.mrf.mxu3 }
  0xfd   :  { %v80_v24 = vadd.f32 %v77_v22, %v840_v23 }
  0xfe   :  { %v843_v25 = vpop.f32.mrf.mxu0 }
  0xff   :  { %v79_v26 = vadd.f32 %v77_v22, %v843_v25  ;;  %109 = vrot.lane.b32.xlu2 %v80_v24, %s785_s23 }
 0x101   :  { %107 = vrot.lane.b32.xlu1 %v79_v26, %s785_s23 }
 0x159   :  { %v884_v41 = vpop.permute.xlu2 %109 }
 0x15a   :  { %v114_v45 = vrot.slane %v884_v41, 7  ;;  %v185_v46 = vrot.slane %v884_v41, 1 }
 0x173   :  { %v886_v42 = vpop.permute.xlu1 %107 }
 0x174   :  { %v113_v47 = vrot.slane %v886_v42, 7  ;;  %v184_v48 = vrot.slane %v886_v42, 1  ;;  %694 = vmatmul.msk.f32.vlgmr.msra.gmra.mxu1 %vm43_vm2, %v886_v42 }
 0x176   :  { %v117_v51 = vsel %vm115_vm9, %v114_v45, %v113_v47  ;;  %v187_v52 = vsel %vm186_vm10, %v184_v48, %v185_v46  ;;  %v116_v56 = vsel %vm115_vm9, %v113_v47, %v114_v45  ;;  %v188_v58 = vsel %vm186_vm10, %v185_v46, %v184_v48  ;;  %v293_v45 = vld [vmem:[%s1108_s1 + $0xb0] sm:$0xff]  ;;  %v292_v46 = vld [vmem:[%s1108_s1 + $0xa8] sm:$0xff]  ;;  %v291_v47 = vld [vmem:[%s1108_s1 + $0xa0] sm:$0xff] }
 0x177   :  { %v118_v53 = vmul.f32 %v889_v43, %v117_v51  ;;  %v189_v54 = vmul.f32 %v893_v44, %v187_v52  ;;  %v119_v59 = vmul.f32 %v915_v55, %v116_v56  ;;  %v190_v60 = vmul.f32 %v920_v57, %v188_v58  ;;  %314 = vmatpush.msrb.mxu0 %v293_v45  ;;  %v362_v48 = vld [vmem:[%s1108_s1 + $0xd8] sm:$0xff]  ;;  %v289_v56 = vld [vmem:[%s1108_s1 + $0x90] sm:$0xff]  ;;  %v360_v58 = vld [vmem:[%s1108_s1 + $0xc8] sm:$0xff] }
 0x178   :  { %381 = vmatpush.msrb.mxu2 %v362_v48  ;;  %343 = vmatpush.msrb.mxu1 %v289_v56 }
 0x179   :  { %696 = vmatmul.msk.f32.vlgmr.msra.gmra.mxu2 %vm43_vm2, %v118_v53  ;;  %698 = vmatmul.msk.f32.vlgmr.msrb.gmra.mxu3 %vm43_vm2, %v189_v54 }
 0x17a   :  { %315 = vmatpush.msrb.mxu0 %v292_v46  ;;  %382 = vmatpush.msrb.mxu2 %v361_v50 }
 0x17c   :  { %695 = vmatmul.msk.f32.gmra.mxu1 %vm43_vm2, %v884_v41  ;;  %316 = vmatpush.msrb.mxu0 %v291_v47 }
 0x17d   :  { %383 = vmatpush.msrb.mxu2 %v360_v58 }
 0x181   :  { %697 = vmatmul.msk.f32.gmra.mxu2 %vm43_vm2, %v119_v59  ;;  %699 = vmatmul.msk.f32.gmra.mxu3 %vm43_vm2, %v190_v60  ;;  %v288_v59 = vld [vmem:[%s1108_s1 + $0x88] sm:$0xff]  ;;  %v287_v60 = vld [vmem:[%s1108_s1 + $0x80] sm:$0xff] }
 0x182   :  { %344 = vmatpush.msrb.mxu1 %v288_v59 }
 0x184   :  { %345 = vmatpush.msrb.mxu1 %v287_v60 }
 0x1f1   :  { %v149_v61 = vpop.f32.mrf.mxu1 }
 0x1f9   :  { %v152_v5 = vpop.f32.mrf.mxu1 }
 0x1fc   :  { %v178_v62 = vpop.f32.mrf.mxu2  ;;  %v218_v63 = vpop.f32.mrf.mxu3 }
 0x1fd   :  { %v179_v0 = vadd.f32 %v178_v62, %v149_v61 }
 0x1ff   :  { %v224_v2 = vadd.f32 %v218_v63, %v179_v0 }
 0x201   :  { %v227_v3 = vadd.f32 %v226_v1, %v224_v2 }
 0x203   :  { %v700_v4 = vmul.f32 -1.442695, %v227_v3 }
 0x204   :  { %v181_v6 = vpop.f32.mrf.mxu2  ;;  %v221_v9 = vpop.f32.mrf.mxu3 }
 0x205   :  { %732 = vpow2.f32 %v700_v4  ;;  %v182_v7 = vadd.f32 %v181_v6, %v152_v5 }
 0x207   :  { %v225_v11 = vadd.f32 %v221_v9, %v182_v7 }
 0x209   :  { %v932_v13 = vadd.f32 %v226_v1, %v225_v11 }
 0x20b   :  { %v733_v14 = vpop.eup %732  ;;  %v701_v15 = vmul.f32 -1.442695, %v932_v13 }
 0x20c   :  { %v235_v16 = vadd.f32 1.0, %v733_v14 }
 0x20d   :  { %734 = vpow2.f32 %v701_v15 }
 0x20e   :  { %736 = vrcp.f32 %v235_v16  ;;  %v248_v22 = vand.u32 2147483648, %v235_v16  ;;  %v246_v26 = vand.u32 2147483647, %v235_v16  ;;  %vm242_vm14 = vweird.f32 %v235_v16 }
 0x210   :  { %v249_v29 = vor.u32 1.1754944e-38, %v248_v22  ;;  %vm247_vm0 = vcmp.eq.f32.partialorder %v246_v26, 8.507059e+37 }
 0x213   :  { %v735_v17 = vpop.eup %734 }
 0x214   :  { %v737_v18 = vpop.eup %736  ;;  %v236_v19 = vadd.f32 1.0, %v735_v17  ;;  %v394_v17 = vperm.slane %v825_v8, 1 }
 0x215   :  { %v238_v20 = vmul.f32 %v737_v18, %v235_v16  ;;  %vm243_vm13 = vweird.f32 %v737_v18 }
 0x216   :  { %738 = vrcp.f32 %v236_v19  ;;  %vm244_vm15 = vmor %vm242_vm14, %vm243_vm13  ;;  %v263_v34 = vand.u32 2147483648, %v236_v19  ;;  %v261_v36 = vand.u32 2147483647, %v236_v19  ;;  %vm257_vm3 = vweird.f32 %v236_v19 }
 0x217   :  { %v239_v21 = vsub.f32 1.0, %v238_v20 }
 0x218   :  { %v264_v38 = vor.u32 1.1754944e-38, %v263_v34  ;;  %vm262_vm5 = vcmp.eq.f32.partialorder %v261_v36, 8.507059e+37 }
 0x219   :  { %v240_v24 = vmul.f32 %v737_v18, %v239_v21 }
 0x21b   :  { %v241_v27 = vadd.f32 %v737_v18, %v240_v24 }
 0x21c   :  { %v739_v28 = vpop.eup %738 }
 0x21d   :  { %v245_v30 = vsel %vm244_vm15, %v737_v18, %v241_v27  ;;  %v253_v31 = vmul.f32 %v739_v28, %v236_v19  ;;  %vm258_vm1 = vweird.f32 %v739_v28 }
 0x21e   :  { %v250_v32 = vsel %vm247_vm0, %v249_v29, %v245_v30  ;;  %vm259_vm4 = vmor %vm257_vm3, %vm258_vm1 }
 0x21f   :  { %269 = vrot.lane.b32.xlu2 %v250_v32, %s785_s23  ;;  %v254_v33 = vsub.f32 1.0, %v253_v31 }
 0x221   :  { %v255_v35 = vmul.f32 %v739_v28, %v254_v33 }
 0x223   :  { %v256_v37 = vadd.f32 %v739_v28, %v255_v35 }
 0x225   :  { %v260_v39 = vsel %vm259_vm4, %v739_v28, %v256_v37 }
 0x226   :  { %v265_v40 = vsel %vm262_vm5, %v264_v38, %v260_v39 }
 0x227   :  { %271 = vrot.lane.b32.xlu0 %v265_v40, %s785_s23 }
 0x279   :  { %v270_v51 = vpop.permute.xlu2 %269 }
 0x27a   :  { %v275_v52 = vmul.f32 %v270_v51, %v227_v3 }
 0x27c   :  { %v277_v53 = vadd.f32 %v275_v52, %v886_v42  ;;  %v359_v42 = vld [vmem:[%s1108_s1 + $0xc0] sm:$0xff] }
 0x27d   :  { %384 = vmatpush.msrb.mxu2 %v359_v42 }
 0x27e   :  { %v956_v54 = vmul.f32 0.70710677, %v277_v53 }
 0x280   :  { %702 = vmatmul.msk.f32.vlgmr.msrb.gmra.mxu0 %vm43_vm2, %v956_v54  ;;  %v281_v1 = vrot.slane %v956_v54, 7  ;;  %v353_v2 = vrot.slane %v956_v54, 1 }
 0x299   :  { %v272_v61 = vpop.permute.xlu0 %271 }
 0x29a   :  { %v276_v62 = vmul.f32 %v272_v61, %v932_v13  ;;  %v462_v61 = vld [vmem:[%s1108_s1 + $0x118] sm:$0xff] }
 0x29b   :  { %481 = vmatpush.msra.mxu3 %v462_v61 }
 0x29c   :  { %v278_v63 = vadd.f32 %v276_v62, %v884_v41  ;;  %v461_v62 = vld [vmem:[%s1108_s1 + $0x110] sm:$0xff] }
 0x29d   :  { %482 = vmatpush.msra.mxu3 %v461_v62 }
 0x29e   :  { %v977_v0 = vmul.f32 0.70710677, %v278_v63  ;;  %v458_v63 = vld [vmem:[%s1108_s1 + $0xf8] sm:$0xff] }
 0x29f   :  { %510 = vmatpush.msra.mxu0 %v458_v63 }
 0x2a0   :  { %v282_v3 = vrot.slane %v977_v0, 7  ;;  %v354_v4 = vrot.slane %v977_v0, 1  ;;  %703 = vmatmul.msk.f32.gmra.mxu0 %vm43_vm2, %v977_v0 }
 0x2a2   :  { %v284_v5 = vsel %vm115_vm9, %v282_v3, %v281_v1  ;;  %v355_v6 = vsel %vm186_vm10, %v353_v2, %v354_v4  ;;  %v283_v9 = vsel %vm115_vm9, %v281_v1, %v282_v3  ;;  %v356_v11 = vsel %vm186_vm10, %v354_v4, %v353_v2  ;;  %v530_v1 = vld [vmem:[%s1108_s1 + $0x138] sm:$0xff]  ;;  %v460_v2 = vld [vmem:[%s1108_s1 + $0x108] sm:$0xff]  ;;  %v459_v3 = vld [vmem:[%s1108_s1 + $0x100] sm:$0xff] }
 0x2a3   :  { %v285_v41 = vmul.f32 %v889_v43, %v284_v5  ;;  %v357_v7 = vmul.f32 %v893_v44, %v355_v6  ;;  %v286_v12 = vmul.f32 %v915_v55, %v283_v9  ;;  %v358_v13 = vmul.f32 %v920_v57, %v356_v11  ;;  %549 = vmatpush.msra.mxu1 %v530_v1  ;;  %v457_v4 = vld [vmem:[%s1108_s1 + $0xf0] sm:$0xff]  ;;  %v456_v6 = vld [vmem:[%s1108_s1 + $0xe8] sm:$0xff]  ;;  %v527_v9 = vld [vmem:[%s1108_s1 + $0x120] sm:$0xff] }
 0x2a4   :  { %483 = vmatpush.msra.mxu3 %v460_v2  ;;  %v529_v5 = vld [vmem:[%s1108_s1 + $0x130] sm:$0xff]  ;;  %511 = vmatpush.msra.mxu0 %v457_v4 }
 0x2a5   :  { %704 = vmatmul.msk.f32.vlgmr.msrb.gmra.mxu1 %vm43_vm2, %v285_v41  ;;  %706 = vmatmul.msk.f32.vlgmr.msrb.gmra.mxu2 %vm43_vm2, %v357_v7  ;;  %v528_v41 = vld [vmem:[%s1108_s1 + $0x128] sm:$0xff]  ;;  %v455_v7 = vld [vmem:[%s1108_s1 + $0xe0] sm:$0xff] }
 0x2a6   :  { %484 = vmatpush.msra.mxu3 %v459_v3  ;;  %550 = vmatpush.msra.mxu1 %v529_v5 }
 0x2a7   :  { %512 = vmatpush.msra.mxu0 %v456_v6 }
 0x2a8   :  { %551 = vmatpush.msra.mxu1 %v528_v41 }
 0x2a9   :  { %513 = vmatpush.msra.mxu0 %v455_v7 }
 0x2aa   :  { %552 = vmatpush.msra.mxu1 %v527_v9 }
 0x2ad   :  { %705 = vmatmul.msk.f32.gmra.mxu1 %vm43_vm2, %v286_v12  ;;  %707 = vmatmul.msk.f32.gmra.mxu2 %vm43_vm2, %v358_v13 }
 0x2fd   :  { %v318_v15 = vpop.f32.mrf.mxu0 }
 0x31d   :  { %v321_v24 = vpop.f32.mrf.mxu0 }
 0x322   :  { %v347_v14 = vpop.f32.mrf.mxu1 }
 0x323   :  { %v348_v16 = vadd.f32 %v347_v14, %v318_v15 }
 0x328   :  { %v386_v18 = vpop.f32.mrf.mxu2 }
 0x329   :  { %v392_v19 = vadd.f32 %v386_v18, %v348_v16 }
 0x32a   :  { %v350_v21 = vpop.f32.mrf.mxu1 }
 0x32b   :  { %v1002_v20 = vadd.f32 %v394_v17, %v392_v19  ;;  %v351_v26 = vadd.f32 %v350_v21, %v321_v24 }
 0x32d   :  { %v708_v22 = vmul.f32 -1.442695, %v1002_v20 }
 0x32f   :  { %740 = vpow2.f32 %v708_v22 }
 0x330   :  { %v389_v27 = vpop.f32.mrf.mxu2 }
 0x331   :  { %v393_v28 = vadd.f32 %v389_v27, %v351_v26 }
 0x333   :  { %v1005_v29 = vadd.f32 %v394_v17, %v393_v28 }
 0x335   :  { %v741_v30 = vpop.eup %740  ;;  %v709_v31 = vmul.f32 -1.442695, %v1005_v29 }
 0x336   :  { %v403_v32 = vadd.f32 1.0, %v741_v30 }
 0x337   :  { %742 = vpow2.f32 %v709_v31 }
 0x338   :  { %744 = vrcp.f32 %v403_v32  ;;  %v416_v38 = vand.u32 2147483648, %v403_v32  ;;  %v414_v40 = vand.u32 2147483647, %v403_v32  ;;  %vm410_vm7 = vweird.f32 %v403_v32 }
 0x33a   :  { %v417_v47 = vor.u32 1.1754944e-38, %v416_v38  ;;  %vm415_vm11 = vcmp.eq.f32.partialorder %v414_v40, 8.507059e+37  ;;  %v619_v40 = vld [vmem:[%s1108_s1 + $0x150] sm:$0xff] }
 0x33d   :  { %v743_v33 = vpop.eup %742 }
 0x33e   :  { %v745_v34 = vpop.eup %744  ;;  %v404_v35 = vadd.f32 1.0, %v743_v33  ;;  %v562_v33 = vperm.slane %v825_v8, 2 }
 0x33f   :  { %v406_v36 = vmul.f32 %v745_v34, %v403_v32  ;;  %vm411_vm6 = vweird.f32 %v745_v34 }
 0x340   :  { %746 = vrcp.f32 %v404_v35  ;;  %vm412_vm8 = vmor %vm410_vm7, %vm411_vm6  ;;  %v431_v52 = vand.u32 2147483648, %v404_v35  ;;  %v429_v56 = vand.u32 2147483647, %v404_v35  ;;  %vm425_vm13 = vweird.f32 %v404_v35 }
 0x341   :  { %v407_v37 = vsub.f32 1.0, %v406_v36  ;;  %vm665_vm7 = vcmask 523264  }
 0x342   :  { %v432_v59 = vor.u32 1.1754944e-38, %v431_v52  ;;  %vm430_vm15 = vcmp.eq.f32.partialorder %v429_v56, 8.507059e+37 }
 0x343   :  { %v408_v39 = vmul.f32 %v745_v34, %v407_v37 }
 0x345   :  { %v409_v45 = vadd.f32 %v745_v34, %v408_v39 }
 0x346   :  { %v747_v46 = vpop.eup %746 }
 0x347   :  { %v413_v48 = vsel %vm412_vm8, %v745_v34, %v409_v45  ;;  %v421_v49 = vmul.f32 %v747_v46, %v404_v35  ;;  %vm426_vm12 = vweird.f32 %v747_v46 }
 0x348   :  { %v418_v50 = vsel %vm415_vm11, %v417_v47, %v413_v48  ;;  %vm427_vm14 = vmor %vm425_vm13, %vm426_vm12 }
 0x349   :  { %437 = vrot.lane.b32.xlu1 %v418_v50, %s785_s23  ;;  %v422_v51 = vsub.f32 1.0, %v421_v49 }
 0x34b   :  { %v423_v53 = vmul.f32 %v747_v46, %v422_v51 }
 0x34d   :  { %v424_v58 = vadd.f32 %v747_v46, %v423_v53 }
 0x34f   :  { %v428_v42 = vsel %vm427_vm14, %v747_v46, %v424_v58  ;;  %v618_v46 = vld [vmem:[%s1108_s1 + $0x148] sm:$0xff] }
 0x350   :  { %v433_v60 = vsel %vm430_vm15, %v432_v59, %v428_v42 }
 0x351   :  { %439 = vrot.lane.b32.xlu2 %v433_v60, %s785_s23 }
 0x3ab   :  { %v440_v11 = vpop.permute.xlu2 %439 }
 0x3ac   :  { %v444_v12 = vmul.f32 %v440_v11, %v1005_v29 }
 0x3ae   :  { %v446_v13 = vadd.f32 %v444_v12, %v977_v0  ;;  %v617_v12 = vld [vmem:[%s1108_s1 + $0x140] sm:$0xff] }
 0x3b0   :  { %v1049_v16 = vmul.f32 0.70710677, %v446_v13 }
 0x3b2   :  { %v450_v19 = vrot.slane %v1049_v16, 7  ;;  %v522_v21 = vrot.slane %v1049_v16, 1 }
 0x3bb   :  { %v438_v14 = vpop.permute.xlu1 %437 }
 0x3bc   :  { %v443_v15 = vmul.f32 %v438_v14, %v1002_v20 }
 0x3be   :  { %v445_v17 = vadd.f32 %v443_v15, %v956_v54 }
 0x3c0   :  { %v1052_v18 = vmul.f32 0.70710677, %v445_v17 }
 0x3c2   :  { %v449_v22 = vrot.slane %v1052_v18, 7  ;;  %v521_v24 = vrot.slane %v1052_v18, 1  ;;  %710 = vmatmul.msk.f32.vlgmr.msra.gmra.mxu3 %vm43_vm2, %v1052_v18 }
 0x3c4   :  { %v452_v0 = vsel %vm115_vm9, %v450_v19, %v449_v22  ;;  %v523_v20 = vsel %vm186_vm10, %v521_v24, %v522_v21  ;;  %v451_v27 = vsel %vm115_vm9, %v449_v22, %v450_v19  ;;  %v524_v28 = vsel %vm186_vm10, %v522_v21, %v521_v24 }
 0x3c5   :  { %v453_v54 = vmul.f32 %v889_v43, %v452_v0  ;;  %v525_v26 = vmul.f32 %v893_v44, %v523_v20  ;;  %v454_v29 = vmul.f32 %v915_v55, %v451_v27  ;;  %v526_v30 = vmul.f32 %v920_v57, %v524_v28  ;;  %v620_v57 = vld [vmem:[%s1108_s1 + $0x158] sm:$0xff]  ;;  %s786_s1 = smov [#allocation2]  }
 0x3c6   :  { %640 = vmatpush.msra.mxu2 %v620_v57  ;;  %v621_v0 = vperm.slane %v825_v8, 4 }
 0x3c7   :  { %712 = vmatmul.msk.f32.vlgmr.msra.gmra.mxu0 %vm43_vm2, %v453_v54  ;;  %714 = vmatmul.msk.f32.vlgmr.msra.gmra.mxu1 %vm43_vm2, %v525_v26 }
 0x3c8   :  { %641 = vmatpush.msra.mxu2 %v619_v40 }
 0x3ca   :  { %711 = vmatmul.msk.f32.gmra.mxu3 %vm43_vm2, %v1049_v16  ;;  %642 = vmatpush.msra.mxu2 %v618_v46 }
 0x3cc   :  { %643 = vmatpush.msra.mxu2 %v617_v12 }
 0x3cf   :  { %713 = vmatmul.msk.f32.gmra.mxu0 %vm43_vm2, %v454_v29  ;;  %715 = vmatmul.msk.f32.gmra.mxu1 %vm43_vm2, %v526_v30 }
 0x444   :  { %v515_v43 = vpop.f32.mrf.mxu0  ;;  %v554_v44 = vpop.f32.mrf.mxu1 }
 0x445   :  { %v486_v31 = vpop.f32.mrf.mxu3 }
 0x446   :  { %v516_v32 = vadd.f32 %v515_v43, %v486_v31 }
 0x448   :  { %v560_v34 = vadd.f32 %v554_v44, %v516_v32 }
 0x44a   :  { %v563_v35 = vadd.f32 %v562_v33, %v560_v34 }
 0x44c   :  { %v716_v36 = vmul.f32 -1.442695, %v563_v35  ;;  %v518_v37 = vpop.f32.mrf.mxu0  ;;  %v557_v55 = vpop.f32.mrf.mxu1 }
 0x44d   :  { %v489_v10 = vpop.f32.mrf.mxu3 }
 0x44e   :  { %748 = vpow2.f32 %v716_v36  ;;  %v519_v38 = vadd.f32 %v518_v37, %v489_v10 }
 0x450   :  { %v561_v39 = vadd.f32 %v557_v55, %v519_v38 }
 0x452   :  { %v564_v45 = vadd.f32 %v562_v33, %v561_v39 }
 0x454   :  { %v749_v47 = vpop.eup %748  ;;  %v717_v48 = vmul.f32 -1.442695, %v564_v45 }
 0x455   :  { %v571_v49 = vadd.f32 1.0, %v749_v47 }
 0x456   :  { %750 = vpow2.f32 %v717_v48 }
 0x457   :  { %752 = vrcp.f32 %v571_v49  ;;  %v584_v58 = vand.u32 2147483648, %v571_v49  ;;  %v582_v42 = vand.u32 2147483647, %v571_v49  ;;  %vm578_vm10 = vweird.f32 %v571_v49 }
 0x459   :  { %v585_v62 = vor.u32 1.1754944e-38, %v584_v58  ;;  %vm583_vm1 = vcmp.eq.f32.partialorder %v582_v42, 8.507059e+37 }
 0x45c   :  { %v751_v50 = vpop.eup %750 }
 0x45d   :  { %v753_v51 = vpop.eup %752  ;;  %v572_v52 = vadd.f32 1.0, %v751_v50 }
 0x45e   :  { %v574_v53 = vmul.f32 %v753_v51, %v571_v49  ;;  %vm579_vm9 = vweird.f32 %v753_v51 }
 0x45f   :  { %754 = vrcp.f32 %v572_v52  ;;  %vm580_vm0 = vmor %vm578_vm10, %vm579_vm9  ;;  %v599_v4 = vand.u32 2147483648, %v572_v52  ;;  %v597_v6 = vand.u32 2147483647, %v572_v52  ;;  %vm593_vm4 = vweird.f32 %v572_v52 }
 0x460   :  { %v575_v56 = vsub.f32 1.0, %v574_v53 }
 0x461   :  { %v600_v7 = vor.u32 1.1754944e-38, %v599_v4  ;;  %vm598_vm6 = vcmp.eq.f32.partialorder %v597_v6, 8.507059e+37 }
 0x462   :  { %v576_v59 = vmul.f32 %v753_v51, %v575_v56 }
 0x464   :  { %v577_v60 = vadd.f32 %v753_v51, %v576_v59 }
 0x465   :  { %v755_v61 = vpop.eup %754 }
 0x466   :  { %v581_v63 = vsel %vm580_vm0, %v753_v51, %v577_v60  ;;  %v589_v1 = vmul.f32 %v755_v61, %v572_v52  ;;  %vm594_vm3 = vweird.f32 %v755_v61 }
 0x467   :  { %v586_v2 = vsel %vm583_vm1, %v585_v62, %v581_v63  ;;  %vm595_vm5 = vmor %vm593_vm4, %vm594_vm3 }
 0x468   :  { %605 = vrot.lane.b32.xlu0 %v586_v2, %s785_s23  ;;  %v590_v3 = vsub.f32 1.0, %v589_v1 }
 0x46a   :  { %v591_v5 = vmul.f32 %v755_v61, %v590_v3 }
 0x46c   :  { %v592_v41 = vadd.f32 %v755_v61, %v591_v5 }
 0x46e   :  { %v596_v9 = vsel %vm595_vm5, %v755_v61, %v592_v41 }
 0x46f   :  { %v601_v11 = vsel %vm598_vm6, %v600_v7, %v596_v9 }
 0x470   :  { %607 = vrot.lane.b32.xlu1 %v601_v11, %s785_s23  ;;  %s672_s23 = sshll.u32 %s786_s1, 4  ;;  %s673_s23 = int_to_ptr.vmem [resolvable:$true] %s672_s23 }
 0x4da   :  { %v606_v13 = vpop.permute.xlu0 %605 }
 0x4db   :  { %v611_v14 = vmul.f32 %v606_v13, %v563_v35 }
 0x4dd   :  { %v613_v15 = vadd.f32 %v611_v14, %v1052_v18 }
 0x4df   :  { %v615_v17 = vmul.f32 0.70710677, %v613_v15 }
 0x4e1   :  { %718 = vmatmul.msk.f32.vlgmr.msra.gmra.mxu2 %vm43_vm2, %v615_v17 }
 0x4e2   :  { %v608_v19 = vpop.permute.xlu1 %607 }
 0x4e3   :  { %v612_v21 = vmul.f32 %v608_v19, %v564_v45 }
 0x4e5   :  { %v614_v22 = vadd.f32 %v612_v21, %v1049_v16 }
 0x4e7   :  { %v616_v24 = vmul.f32 0.70710677, %v614_v22 }
 0x4e9   :  { %719 = vmatmul.msk.f32.gmra.mxu2 %vm43_vm2, %v616_v24 }
 0x564   :  { %v645_v20 = vpop.f32.mrf.mxu2 }
 0x565   :  { %v646_v54 = vadd.f32 %v645_v20, %v621_v0 }
 0x567   :  { %v651_v26 = vadd.f32 %v646_v54, %v843_v25 }
 0x569   :  { %v653_v27 = vmul.f32 0.70710677, %v651_v26 }
 0x56b   :  { %657 = vrot.lane.b32.xlu2 %v653_v27, %s783_s0 }
 0x56c   :  { %v648_v18 = vpop.f32.mrf.mxu2 }
 0x56d   :  { %v649_v28 = vadd.f32 %v648_v18, %v621_v0 }
 0x56f   :  { %v652_v29 = vadd.f32 %v649_v28, %v840_v23 }
 0x571   :  { %v654_v30 = vmul.f32 0.70710677, %v652_v29 }
 0x573   :  { %659 = vrot.lane.b32.xlu0 %v654_v30, %s783_s0 }
 0x5c5   :  { %v658_v16 = vpop.permute.xlu2 %657 }
 0x5c6   :  { %v663_v43 = vsel %vm43_vm2, %v646_v54, %v658_v16 }
 0x5c7   :  { %666 = vst.msk [vmem:[#allocation2] sm:$0xff] %vm665_vm7, %v663_v43 }
 0x5e5   :  { %v660_v8 = vpop.permute.xlu0 %659 }
 0x5e6   :  { %v664_v25 = vsel %vm43_vm2, %v649_v28, %v660_v8 }
 0x5e7   :  { %667 = vst.msk [vmem:[#allocation2 + $0x8] sm:$0xff] %vm665_vm7, %v664_v25 }
 0x5e8   :  { %680 = dma.vmem_to_hbm [thread:$0]  %s673_s23, 256, %s675_s25, [#allocation3], %s787_s26, %s787_s26, %s788_s27  }
 0x5e9   :  { %780 = dma.done.wait [#allocation3], 256  }
 0x5ea   :  { %781 = vsyncadd [#allocation3], 4294967040 }
 0x5eb   :  { %685 = vsyncpa [#allocation3], 1 }

</bundles_post_ra>
